<compile_context>
chip_gen: v6e
topology: v6e:2x2x1
jax: 0.10.0
libtpu: 0.0.40
codegen_flags: <defaults>
</compile_context>

<pallas_src>
import functools

import jax
import jax.numpy as jnp
from jax.experimental import pallas as pl
from jax.experimental.pallas import tpu as pltpu


def _round_up(x, m):
    return ((x + m - 1) // m) * m


def _cdiv(a, b):
    return -(-a // b)


# VMEM working-set target used to cap the batch tile.  Safe on every chip:
# v7x has 64 MiB physical; v5e/v6e have 128 MiB (we raise the scoped limit
# explicitly via vmem_limit_bytes below).
_VMEM_WORKING_SET_TARGET = 24 << 20


def _leaf_kernel(x_ref, w_ref, b_ref, c_ref, h_ref, *, mem_pad):
    x = x_ref[...]                                            # (tb, in_dim)
    # Single fused matmul on the MXU: (tb, in_dim) @ (in_dim, 2*mem_pad), f32 acc.
    z = jnp.dot(x, w_ref[...], preferred_element_type=jnp.float32) + b_ref[...]
    zc = z[:, :mem_pad]                                       # c pre-activation
    zo = z[:, mem_pad:]                                       # o pre-activation
    c = zc
    # sigmoid(z) = 0.5 * (1 + tanh(0.5*z)): 2 EUP pushes per element (vs 3).
    o = 0.5 * (1.0 + jnp.tanh(0.5 * zo))
    h = o * jnp.tanh(c)
    c_ref[...] = c.astype(c_ref.dtype)
    h_ref[...] = h.astype(h_ref.dtype)


def fuse_leaf_params(wc, bc, wo, bo, *, weights_dtype=jnp.float32):
    """Build the fused, lane-padded [Wc | Wo] weight and bias ONCE.

    Hoisted out of the per-leaf forward: under jit the zero-pad + scatter is
    per-call HBM traffic, pure overhead when this module fires once per leaf.

    wc/wo: (in_dim, mem_dim) (pre-transposed vs. PyTorch (mem_dim, in_dim));
    bc/bo: (mem_dim,) or (1, mem_dim).
    Pass weights_dtype=jnp.bfloat16 on v6e/v7x to halve weight DMA / residency
    (bf16-level error on the pre-activations).
    Returns (w_fused, b_fused, mem_dim); w_fused: (in_dim, 2*mem_pad).
    """
    in_dim, mem_dim = wc.shape
    mem_pad = max(128, _round_up(mem_dim, 128))               # lane-dense half-width
    w = jnp.zeros((in_dim, 2 * mem_pad), weights_dtype)
    w = w.at[:, :mem_dim].set(wc.astype(weights_dtype))
    w = w.at[:, mem_pad:mem_pad + mem_dim].set(wo.astype(weights_dtype))
    b = jnp.zeros((1, 2 * mem_pad), jnp.float32)
    b = b.at[:, :mem_dim].set(jnp.reshape(bc, (1, -1)).astype(jnp.float32))
    b = b.at[:, mem_pad:mem_pad + mem_dim].set(jnp.reshape(bo, (1, -1)).astype(jnp.float32))
    return w, b, mem_dim


def binary_tree_leaf_forward(x, w_fused, b_fused, mem_dim, *, block_b=512):
    """x: (B, in_dim); (w_fused, b_fused, mem_dim) from fuse_leaf_params.

    Returns (c, h), both (B, mem_dim) float32.
    Note: batch all tree leaves into one call (stack inputs) rather than
    launching per leaf — tiny-B launches are pure overhead.
    """
    B, in_dim = x.shape
    two_mem_pad = w_fused.shape[1]
    mem_pad = two_mem_pad // 2
    assert w_fused.shape[0] == in_dim and mem_pad >= mem_dim

    # ---- batch tile selection -------------------------------------------
    # Equal-split the batch (padding < 8 rows per tile instead of rounding B
    # up to block_b, which can waste ~2x DMA / MXU / writeback).
    n_steps = max(1, _cdiv(B, block_b))
    # v7x has 2 TensorCores: give the "parallel" axis >=2 steps when the batch
    # is big enough for two >=128-row tiles.
    if n_steps < 2 and B >= 256:
        n_steps = 2
    tb = _round_up(_cdiv(B, n_steps), 8)      # multiple of 8 regardless of block_b

    # Cap tb against an explicit VMEM budget.  Working set (worst case,
    # double-buffered resident): W + bias resident, double-buffered x tile,
    # two double-buffered output tiles, and the f32 z temporary in the body.
    w_bytes = in_dim * two_mem_pad * w_fused.dtype.itemsize
    bias_bytes = two_mem_pad * 4
    fixed_bytes = 2 * (w_bytes + bias_bytes)
    per_row_bytes = (2 * in_dim * x.dtype.itemsize          # x tile, double-buffered
                     + 2 * 2 * mem_pad * 4                  # c, h tiles, double-buffered
                     + two_mem_pad * 4)                      # f32 z temporary
    # TODO(synk): for very large in_dim (fixed_bytes > ~16 MiB) add a K grid
    # axis ("arbitrary", last) + VMEM accumulator instead of shrinking tb.
    tb_budget = max(8, ((_VMEM_WORKING_SET_TARGET - fixed_bytes)
                        // max(per_row_bytes, 1)) // 8 * 8)
    tb = max(8, min(tb, tb_budget))

    n_steps = _cdiv(B, tb)
    b_pad = n_steps * tb
    x_p = x if b_pad == B else jnp.pad(x, ((0, b_pad - B), (0, 0)))

    vmem_need = fixed_bytes + per_row_bytes * tb
    vmem_limit = int(min(max(int(vmem_need * 1.5) + (2 << 20), 8 << 20), 64 << 20))

    kernel = functools.partial(_leaf_kernel, mem_pad=mem_pad)
    out_shape = (
        jax.ShapeDtypeStruct((b_pad, mem_pad), jnp.float32),   # c (padded)
        jax.ShapeDtypeStruct((b_pad, mem_pad), jnp.float32),   # h (padded)
    )

    def run(single_buffer_resident):
        if single_buffer_resident:
            # Constant block index => resident across the grid; single-buffer
            # to reclaim VMEM for larger batch tiles.
            w_spec = pl.BlockSpec((in_dim, two_mem_pad), lambda i: (0, 0),
                                  pipeline_mode=pl.Buffered(1))
            b_spec = pl.BlockSpec((1, two_mem_pad), lambda i: (0, 0),
                                  pipeline_mode=pl.Buffered(1))
        else:
            w_spec = pl.BlockSpec((in_dim, two_mem_pad), lambda i: (0, 0))
            b_spec = pl.BlockSpec((1, two_mem_pad), lambda i: (0, 0))
        return pl.pallas_call(
            kernel,
            out_shape=out_shape,
            grid_spec=pltpu.PrefetchScalarGridSpec(
                num_scalar_prefetch=0,
                grid=(n_steps,),
                in_specs=[
                    pl.BlockSpec((tb, in_dim), lambda i: (i, 0)),   # x: tiled on batch
                    w_spec,                                         # fused W: resident
                    b_spec,                                         # fused bias: resident
                ],
                out_specs=[
                    pl.BlockSpec((tb, mem_pad), lambda i: (i, 0)),
                    pl.BlockSpec((tb, mem_pad), lambda i: (i, 0)),
                ],
            ),
            compiler_params=pltpu.CompilerParams(
                dimension_semantics=("parallel",),   # megacore sharding on v7x
                vmem_limit_bytes=vmem_limit,
            ),
        )(x_p, w_fused, b_fused)

    try:
        c_p, h_p = run(True)
    except Exception:
        # pipeline_mode=pl.Buffered(1) unsupported on this jax/libtpu -> default buffering.
        c_p, h_p = run(False)

    # Skip the un-pad copy when nothing was padded (it doubles output HBM traffic).
    if b_pad == B and mem_pad == mem_dim:
        return c_p, h_p
    return c_p[:B, :mem_dim], h_p[:B, :mem_dim]


def init_params(key, in_dim, mem_dim):
    """Deterministic init mirroring nn.Linear default: U(-1/sqrt(in), 1/sqrt(in))."""
    k1, k2, k3, k4 = jax.random.split(key, 4)
    bound = 1.0 / jnp.sqrt(jnp.float32(in_dim))
    # Stored pre-transposed: (in_dim, mem_dim) == W^T of PyTorch's (mem_dim, in_dim)
    wc = jax.random.uniform(k1, (in_dim, mem_dim), jnp.float32, -bound, bound)
    bc = jax.random.uniform(k2, (1, mem_dim), jnp.float32, -bound, bound)
    wo = jax.random.uniform(k3, (in_dim, mem_dim), jnp.float32, -bound, bound)
    bo = jax.random.uniform(k4, (1, mem_dim), jnp.float32, -bound, bound)
    return wc, bc, wo, bo


if __name__ == "__main__":
    key = jax.random.PRNGKey(0)
    batch, in_dim, mem_dim = 2, 32, 32

    k_x, k_p = jax.random.split(key)
    x = jax.random.normal(k_x, (batch, in_dim), jnp.float32)
    wc, bc, wo, bo = init_params(k_p, in_dim, mem_dim)

    # Fuse/pad weights ONCE (outside the per-call forward), reuse for all leaves.
    w_fused, b_fused, md = fuse_leaf_params(wc, bc, wo, bo)

    c, h = binary_tree_leaf_forward(x, w_fused, b_fused, md)
    jax.block_until_ready((c, h))

    # Reference check in plain JAX (same math as the PyTorch module).
    c_ref = x @ wc + bc
    h_ref = jax.nn.sigmoid(x @ wo + bo) * jnp.tanh(c_ref)
    assert c.shape == (batch, mem_dim) and h.shape == (batch, mem_dim)
    assert jnp.allclose(c, c_ref, atol=1e-5), "c mismatch"
    assert jnp.allclose(h, h_ref, atol=1e-5), "h mismatch"

    print("KERNEL_OK")
</pallas_src>

<mosaic_0001>
module attributes {stable_mosaic.version = 11 : i64} {
  func.func @_leaf_kernel(%arg0: i32, %arg1: memref<8x32xf32, #tpu.memory_space<vmem>>, %arg2: memref<32x256xf32, #tpu.memory_space<vmem>>, %arg3: memref<1x256xf32, #tpu.memory_space<vmem>>, %arg4: memref<8x128xf32, #tpu.memory_space<vmem>>, %arg5: memref<8x128xf32, #tpu.memory_space<vmem>>) attributes {dimension_semantics = [#tpu.dimension_semantics<parallel>], iteration_bounds = array<i64: 1>, scalar_prefetch = 0 : i64, scratch_operands = 0 : i64, tpu.core_type = #tpu.core_type<tc>, window_params = [{transform_indices = @transform_0, window_bounds = array<i64: 8, 32>}, {pipeline_mode = #tpu.pipeline_mode<synchronous>, transform_indices = @transform_1, window_bounds = array<i64: 32, 256>}, {pipeline_mode = #tpu.pipeline_mode<synchronous>, transform_indices = @transform_2, window_bounds = array<i64: 1, 256>}, {transform_indices = @transform_3, window_bounds = array<i64: 8, 128>}, {transform_indices = @transform_4, window_bounds = array<i64: 8, 128>}]} {
    %c0 = arith.constant 0 : index
    %c0_0 = arith.constant 0 : index
    %0 = vector.load %arg1[%c0, %c0_0] : memref<8x32xf32, #tpu.memory_space<vmem>>, vector<8x32xf32>
    %c0_1 = arith.constant 0 : index
    %c0_2 = arith.constant 0 : index
    %1 = vector.load %arg2[%c0_1, %c0_2] : memref<32x256xf32, #tpu.memory_space<vmem>>, vector<32x256xf32>
    %cst = arith.constant dense<0.000000e+00> : vector<8x256xf32>
    %2 = tpu.matmul %0, %1, %cst {dimension_numbers = #tpu.dot_dimension_numbers<[1], [0], [0], [1], [0, 0, 1, 1], [], []>} : vector<8x32xf32>, vector<32x256xf32>, vector<8x256xf32> -> vector<8x256xf32>
    %c0_3 = arith.constant 0 : index
    %c0_4 = arith.constant 0 : index
    %3 = vector.load %arg3[%c0_3, %c0_4] : memref<1x256xf32, #tpu.memory_space<vmem>>, vector<1x256xf32>
    %4 = vector.broadcast %3 : vector<1x256xf32> to vector<8x256xf32>
    %5 = arith.addf %2, %4 : vector<8x256xf32>
    %6 = vector.extract_strided_slice %5 {offsets = [0, 0], sizes = [8, 128], strides = [1, 1]} : vector<8x256xf32> to vector<8x128xf32>
    %7 = vector.extract_strided_slice %5 {offsets = [0, 128], sizes = [8, 128], strides = [1, 1]} : vector<8x256xf32> to vector<8x128xf32>
    %cst_5 = arith.constant 5.000000e-01 : f32
    %8 = vector.broadcast %cst_5 : f32 to vector<8x128xf32>
    %9 = arith.mulf %8, %7 : vector<8x128xf32>
    %10 = math.tanh %9 : vector<8x128xf32>
    %cst_6 = arith.constant 1.000000e+00 : f32
    %11 = vector.broadcast %cst_6 : f32 to vector<8x128xf32>
    %12 = arith.addf %11, %10 : vector<8x128xf32>
    %cst_7 = arith.constant 5.000000e-01 : f32
    %13 = vector.broadcast %cst_7 : f32 to vector<8x128xf32>
    %14 = arith.mulf %13, %12 : vector<8x128xf32>
    %15 = math.tanh %6 : vector<8x128xf32>
    %16 = arith.mulf %14, %15 : vector<8x128xf32>
    %c0_8 = arith.constant 0 : index
    %c0_9 = arith.constant 0 : index
    %17 = vector.load %arg4[%c0_8, %c0_9] : memref<8x128xf32, #tpu.memory_space<vmem>>, vector<8x128xf32>
    tpu.vector_store %arg4[%c0_8, %c0_9], %6 {strides = array<i32>} : memref<8x128xf32, #tpu.memory_space<vmem>>, vector<8x128xf32>,
    %c0_10 = arith.constant 0 : index
    %c0_11 = arith.constant 0 : index
    %18 = vector.load %arg5[%c0_10, %c0_11] : memref<8x128xf32, #tpu.memory_space<vmem>>, vector<8x128xf32>
    tpu.vector_store %arg5[%c0_10, %c0_11], %16 {strides = array<i32>} : memref<8x128xf32, #tpu.memory_space<vmem>>, vector<8x128xf32>,
    return
  }
  func.func @transform_0(%arg0: i32) -> (i32, i32) {
    %c0_i32 = arith.constant 0 : i32
    %c0_i32_0 = arith.constant 0 : i32
    return %arg0, %c0_i32 : i32, i32
  }
  func.func @transform_1(%arg0: i32) -> (i32, i32) {
    %c0_i32 = arith.constant 0 : i32
    %c0_i32_0 = arith.constant 0 : i32
    %c0_i32_1 = arith.constant 0 : i32
    return %c0_i32, %c0_i32_0 : i32, i32
  }
  func.func @transform_2(%arg0: i32) -> (i32, i32) {
    %c0_i32 = arith.constant 0 : i32
    %c0_i32_0 = arith.constant 0 : i32
    %c0_i32_1 = arith.constant 0 : i32
    return %c0_i32, %c0_i32_0 : i32, i32
  }
  func.func @transform_3(%arg0: i32) -> (i32, i32) {
    %c0_i32 = arith.constant 0 : i32
    %c0_i32_0 = arith.constant 0 : i32
    return %arg0, %c0_i32 : i32, i32
  }
  func.func @transform_4(%arg0: i32) -> (i32, i32) {
    %c0_i32 = arith.constant 0 : i32
    %c0_i32_0 = arith.constant 0 : i32
    return %arg0, %c0_i32 : i32, i32
  }
}

module attributes {stable_mosaic.version = 11 : i64} {
  func.func @_leaf_kernel(%arg0: i32, %arg1: memref<8x32xf32, #tpu.memory_space<vmem>>, %arg2: memref<32x256xf32, #tpu.memory_space<vmem>>, %arg3: memref<1x256xf32, #tpu.memory_space<vmem>>, %arg4: memref<8x128xf32, #tpu.memory_space<vmem>>, %arg5: memref<8x128xf32, #tpu.memory_space<vmem>>) attributes {dimension_semantics = [#tpu.dimension_semantics<parallel>], iteration_bounds = array<i64: 1>, scalar_prefetch = 0 : i64, scratch_operands = 0 : i64, tpu.core_type = #tpu.core_type<tc>, window_params = [{transform_indices = @transform_0, window_bounds = array<i64: 8, 32>}, {pipeline_mode = #tpu.pipeline_mode<synchronous>, transform_indices = @transform_1, window_bounds = array<i64: 32, 256>}, {pipeline_mode = #tpu.pipeline_mode<synchronous>, transform_indices = @transform_2, window_bounds = array<i64: 1, 256>}, {transform_indices = @transform_3, window_bounds = array<i64: 8, 128>}, {transform_indices = @transform_4, window_bounds = array<i64: 8, 128>}]} {
    %c0 = arith.constant 0 : index
    %c0_0 = arith.constant 0 : index
    %0 = vector.load %arg1[%c0, %c0_0] : memref<8x32xf32, #tpu.memory_space<vmem>>, vector<8x32xf32>
    %c0_1 = arith.constant 0 : index
    %c0_2 = arith.constant 0 : index
    %1 = vector.load %arg2[%c0_1, %c0_2] : memref<32x256xf32, #tpu.memory_space<vmem>>, vector<32x256xf32>
    %cst = arith.constant dense<0.000000e+00> : vector<8x256xf32>
    %2 = tpu.matmul %0, %1, %cst {dimension_numbers = #tpu.dot_dimension_numbers<[1], [0], [0], [1], [0, 0, 1, 1], [], []>} : vector<8x32xf32>, vector<32x256xf32>, vector<8x256xf32> -> vector<8x256xf32>
    %c0_3 = arith.constant 0 : index
    %c0_4 = arith.constant 0 : index
    %3 = vector.load %arg3[%c0_3, %c0_4] : memref<1x256xf32, #tpu.memory_space<vmem>>, vector<1x256xf32>
    %4 = vector.broadcast %3 : vector<1x256xf32> to vector<8x256xf32>
    %5 = arith.addf %2, %4 : vector<8x256xf32>
    %6 = vector.extract_strided_slice %5 {offsets = [0, 0], sizes = [8, 128], strides = [1, 1]} : vector<8x256xf32> to vector<8x128xf32>
    %7 = vector.extract_strided_slice %5 {offsets = [0, 128], sizes = [8, 128], strides = [1, 1]} : vector<8x256xf32> to vector<8x128xf32>
    %cst_5 = arith.constant 5.000000e-01 : f32
    %8 = vector.broadcast %cst_5 : f32 to vector<8x128xf32>
    %9 = arith.mulf %8, %7 : vector<8x128xf32>
    %10 = math.tanh %9 : vector<8x128xf32>
    %cst_6 = arith.constant 1.000000e+00 : f32
    %11 = vector.broadcast %cst_6 : f32 to vector<8x128xf32>
    %12 = arith.addf %11, %10 : vector<8x128xf32>
    %cst_7 = arith.constant 5.000000e-01 : f32
    %13 = vector.broadcast %cst_7 : f32 to vector<8x128xf32>
    %14 = arith.mulf %13, %12 : vector<8x128xf32>
    %15 = math.tanh %6 : vector<8x128xf32>
    %16 = arith.mulf %14, %15 : vector<8x128xf32>
    %c0_8 = arith.constant 0 : index
    %c0_9 = arith.constant 0 : index
    %17 = vector.load %arg4[%c0_8, %c0_9] : memref<8x128xf32, #tpu.memory_space<vmem>>, vector<8x128xf32>
    tpu.vector_store %arg4[%c0_8, %c0_9], %6 {strides = array<i32>} : memref<8x128xf32, #tpu.memory_space<vmem>>, vector<8x128xf32>,
    %c0_10 = arith.constant 0 : index
    %c0_11 = arith.constant 0 : index
    %18 = vector.load %arg5[%c0_10, %c0_11] : memref<8x128xf32, #tpu.memory_space<vmem>>, vector<8x128xf32>
    tpu.vector_store %arg5[%c0_10, %c0_11], %16 {strides = array<i32>} : memref<8x128xf32, #tpu.memory_space<vmem>>, vector<8x128xf32>,
    return
  }
  func.func @transform_0(%arg0: i32) -> (i32, i32) {
    %c0_i32 = arith.constant 0 : i32
    %c0_i32_0 = arith.constant 0 : i32
    return %arg0, %c0_i32 : i32, i32
  }
  func.func @transform_1(%arg0: i32) -> (i32, i32) {
    %c0_i32 = arith.constant 0 : i32
    %c0_i32_0 = arith.constant 0 : i32
    %c0_i32_1 = arith.constant 0 : i32
    return %c0_i32, %c0_i32_0 : i32, i32
  }
  func.func @transform_2(%arg0: i32) -> (i32, i32) {
    %c0_i32 = arith.constant 0 : i32
    %c0_i32_0 = arith.constant 0 : i32
    %c0_i32_1 = arith.constant 0 : i32
    return %c0_i32, %c0_i32_0 : i32, i32
  }
  func.func @transform_3(%arg0: i32) -> (i32, i32) {
    %c0_i32 = arith.constant 0 : i32
    %c0_i32_0 = arith.constant 0 : i32
    return %arg0, %c0_i32 : i32, i32
  }
  func.func @transform_4(%arg0: i32) -> (i32, i32) {
    %c0_i32 = arith.constant 0 : i32
    %c0_i32_0 = arith.constant 0 : i32
    return %arg0, %c0_i32 : i32, i32
  }
}

</mosaic_0001>

<bundles_post_ra>
// kernel: tpu_custom_call.1
= control target key start
LH: loop header
LB: loop body
LE: loop exit
PB: predicated region body
PF: predicated region fallthrough
CT: control target
= control target key end

     0   :  { %10 = vsyncpa [#allocation3], 0  ;;  %s325_s0 = inlined_call_operand.hbm [shape: f32[8,32], index: 0, kind: input, shape index: {}]   ;;  %s326_s1 = inlined_call_operand.hbm [shape: f32[32,256], index: 1, kind: input, shape index: {}]   ;;  %s327_s2 = inlined_call_operand.vmem [shape: f32[1,256], index: 2, kind: input, shape index: {}]   ;;  %s328_s3 = inlined_call_operand.hbm [shape: f32[8,128], index: 3, kind: output, shape index: {0}]   ;;  %s329_s4 = inlined_call_operand.hbm [shape: f32[8,128], index: 4, kind: output, shape index: {1}]  }
   0x1   :  { %11 = vsyncpa [#allocation6], 0 }
   0x2   :  { %12 = vsyncpa [#allocation4], 0 }
   0x3   :  { %13 = vsyncpa [#allocation9], 0  ;;  %s278_s15 = smov [#allocation2]   ;;  %s279_s17 = smov [#allocation5]  }
   0x4   :  { %s20_s16 = sshll.u32 %s278_s15, 4  ;;  %s29_s18 = sshll.u32 %s279_s17, 4  ;;  %s21_s16 = int_to_ptr.vmem [resolvable:$true] %s20_s16  ;;  %s30_s18 = int_to_ptr.vmem [resolvable:$true] %s29_s18 }
   0x5   :  { %s198_s19 = scalar_lea.vmem %s21_s16, 128  ;;  %p203_p1 = scmp.lt.s32.totalorder %s21_s16, %s21_s16 }
   0x6   :  { %p199_p0 = scmp.ne.s32.totalorder %s21_s16, %s198_s19  ;;  %p204_p2 = scmp.lt.s32.totalorder %s198_s19, %s198_s19 }
   0x8   :  { %p205_p3 = por %p204_p2, %p203_p1 }
   0xa   :  { %p206_p4 = pnand %p205_p3, %p199_p0 }
   0xc   :  { %209 = shalt.err (!%p206_p4)
}
   0xd   :  { %23 = dma.hbm_to_vmem [thread:$0]  %s325_s0, 128, %s21_s16, [#allocation3]  }
   0xe   :  { %s218_s22 = scalar_lea.vmem %s30_s18, 1024  ;;  %p223_p6 = scmp.lt.s32.totalorder %s30_s18, %s30_s18 }
   0xf   :  { %p219_p5 = scmp.ne.s32.totalorder %s30_s18, %s218_s22  ;;  %p224_p7 = scmp.lt.s32.totalorder %s218_s22, %s218_s22 }
  0x11   :  { %p225_p8 = por %p224_p7, %p223_p6 }
  0x13   :  { %p226_p9 = pnand %p225_p8, %p219_p5 }
  0x15   :  { %229 = shalt.err (!%p226_p9)
}
  0x16   :  { %s280_s23 = smov 256   ;;  %s281_s24 = smov 16  }
  0x17   :  { %35 = dma.hbm_to_vmem [thread:$0]  %s326_s1, 1024, %s30_s18, [#allocation6], %s280_s23, %s280_s23, %s281_s24  }
  0x18   :  { %270 = dma.done.wait [#allocation3], 128  }
  0x19   :  { %271 = vsyncadd [#allocation3], 4294967168 }
  0x1a   :  { %272 = dma.done.wait [#allocation6], 1024  }
  0x1b   :  { %273 = vsyncadd [#allocation6], 4294966272  ;;  %v282_v0 = vmov 0.0   ;;  %v52_v1 = vld [vmem:[#allocation5 + $0x38] sm:$0xff]  ;;  %v51_v2 = vld [vmem:[#allocation5 + $0x30] sm:$0xff]  ;;  %vm65_vm0 = vcmask 261120   ;;  %v55_v10 = vlaneseq }
  0x1c   :  { %133 = vmatprep.mubr.f32.mxu0 %v282_v0  ;;  %v50_v3 = vld [vmem:[#allocation5 + $0x28] sm:$0xff]  ;;  %93 = vmatprep.subr.mxu0 %v52_v1  ;;  %v49_v4 = vld [vmem:[#allocation5 + $0x20] sm:$0xff]  ;;  %v48_v5 = vld [vmem:[#allocation5 + $0x18] sm:$0xff]  ;;  %s283_s27 = smov [#allocation7]  }
  0x1d   :  { %94 = vmatpush1.msra.mxu0 %v51_v2  ;;  %v47_v6 = vld [vmem:[#allocation5 + $0x10] sm:$0xff]  ;;  %v46_v7 = vld [vmem:[#allocation5 + $0x8] sm:$0xff]  ;;  %v45_v8 = vld [vmem:[#allocation5] sm:$0xff]  ;;  %v56_v11 = vshrl.u32 %v55_v10, 7  ;;  %s154_s28 = sshll.u32 %s283_s27, 4  ;;  %s155_s28 = int_to_ptr.vmem [resolvable:$true] %s154_s28 }
  0x1e   :  { %95 = vmatprep.subr.mxu0 %v50_v3  ;;  %v44_v9 = vld [vmem:[#allocation2] sm:$0xff]  ;;  %s230_s29 = scalar_lea.vmem %s155_s28, 128  ;;  %p235_p11 = scmp.lt.s32.totalorder %s155_s28, %s155_s28 }
  0x1f   :  { %96 = vmatpush1.msra.mxu0 %v49_v4  ;;  %v57_v12 = vsub.s32 0, %v56_v11  ;;  %v53_v13 = vld [vmem:[%s327_s2] sm:$0x3]  ;;  %v61_v14 = vsub.s32 1, %v56_v11  ;;  %p231_p10 = scmp.ne.s32.totalorder %s155_s28, %s230_s29  ;;  %p236_p12 = scmp.lt.s32.totalorder %s230_s29, %s230_s29 }
  0x20   :  { %97 = vmatprep.subr.mxu0 %v48_v5 }
  0x21   :  { %98 = vmatpush1.msra.mxu0 %v47_v6  ;;  %v58_v15 = vrot.slane %v53_v13, %v57_v12  ;;  %v62_v16 = vrot.slane %v53_v13, %v61_v14  ;;  %p237_p13 = por %p236_p12, %p235_p11 }
  0x22   :  { %99 = vmatprep.subr.mxu0 %v46_v7 }
  0x23   :  { %100 = vmatpush1.msra.mxu0 %v45_v8  ;;  %p238_p0 = pnand %p237_p13, %p231_p10 }
  0x24   :  { %178 = vmatmul.mubr.msk.f32.vlgmr.msra.gmra.mxu0 %vm65_vm0, %v44_v9 }
  0xe4   :  { %v135_v17 = vpop.f32.mrf.mxu0 }
  0xe5   :  { %v136_v18 = vadd.f32 %v135_v17, %v58_v15 }
  0xe6   :  { %v137_v19 = vpop.f32.mrf.mxu0 }
  0xe7   :  { %146 = vst [vmem:[#allocation7] sm:$0xff] %v136_v18  ;;  %v138_v20 = vadd.f32 %v137_v19, %v62_v16 }
  0xe8   :  { %241 = shalt.err (!%p238_p0)
}
  0xe9   :  { %157 = dma.vmem_to_hbm [thread:$0]  %s155_s28, 128, %s328_s3, [#allocation4]   ;;  %v140_v21 = vmul.f32 0.5, %v138_v20 }
  0xea   :  { %s284_s5 = smov [#allocation8]  }
  0xeb   :  { %186 = vtanh.f32 %v140_v21  ;;  %s164_s6 = sshll.u32 %s284_s5, 4  ;;  %s165_s6 = int_to_ptr.vmem [resolvable:$true] %s164_s6 }
  0xec   :  { %188 = vtanh.f32 %v136_v18  ;;  %s250_s7 = scalar_lea.vmem %s165_s6, 128  ;;  %p255_p2 = scmp.lt.s32.totalorder %s165_s6, %s165_s6 }
  0xed   :  { %p251_p1 = scmp.ne.s32.totalorder %s165_s6, %s250_s7  ;;  %p256_p3 = scmp.lt.s32.totalorder %s250_s7, %s250_s7 }
  0xef   :  { %p257_p4 = por %p256_p3, %p255_p2 }
  0xf1   :  { %p258_p5 = pnand %p257_p4, %p251_p1 }
  0xf8   :  { %v187_v22 = vpop.eup %186 }
  0xf9   :  { %v142_v23 = vadd.f32 1.0, %v187_v22  ;;  %v189_v25 = vpop.eup %188 }
  0xfb   :  { %v143_v24 = vmul.f32 0.5, %v142_v23 }
  0xfd   :  { %v145_v26 = vmul.f32 %v189_v25, %v143_v24 }
  0xff   :  { %147 = vst [vmem:[#allocation8] sm:$0xff] %v145_v26 }
 0x100   :  { %261 = shalt.err (!%p258_p5)
}
 0x101   :  { %167 = dma.vmem_to_hbm [thread:$0]  %s165_s6, 128, %s329_s4, [#allocation9]  }
 0x102   :  { %274 = dma.done.wait [#allocation4], 128  }
 0x103   :  { %275 = vsyncadd [#allocation4], 4294967168 }
 0x104   :  { %276 = dma.done.wait [#allocation9], 128  }
 0x105   :  { %277 = vsyncadd [#allocation9], 4294967168 }
 0x106   :  { %174 = vsyncpa [#allocation3], 1 }
 0x107   :  { %175 = vsyncpa [#allocation6], 1 }
 0x108   :  { %176 = vsyncpa [#allocation4], 1 }
 0x109   :  { %177 = vsyncpa [#allocation9], 1 }

// kernel: tpu_custom_call.1
= control target key start
LH: loop header
LB: loop body
LE: loop exit
PB: predicated region body
PF: predicated region fallthrough
CT: control target
= control target key end

     0   :  { %10 = vsyncpa [#allocation3], 0  ;;  %s325_s0 = inlined_call_operand.hbm [shape: f32[8,32], index: 0, kind: input, shape index: {}]   ;;  %s326_s1 = inlined_call_operand.hbm [shape: f32[32,256], index: 1, kind: input, shape index: {}]   ;;  %s327_s2 = inlined_call_operand.vmem [shape: f32[1,256], index: 2, kind: input, shape index: {}]   ;;  %s328_s3 = inlined_call_operand.hbm [shape: f32[8,128], index: 3, kind: output, shape index: {0}]   ;;  %s329_s4 = inlined_call_operand.hbm [shape: f32[8,128], index: 4, kind: output, shape index: {1}]  }
   0x1   :  { %11 = vsyncpa [#allocation6], 0 }
   0x2   :  { %12 = vsyncpa [#allocation4], 0 }
   0x3   :  { %13 = vsyncpa [#allocation9], 0  ;;  %s278_s15 = smov [#allocation2]   ;;  %s279_s17 = smov [#allocation5]  }
   0x4   :  { %s20_s16 = sshll.u32 %s278_s15, 4  ;;  %s29_s18 = sshll.u32 %s279_s17, 4  ;;  %s21_s16 = int_to_ptr.vmem [resolvable:$true] %s20_s16  ;;  %s30_s18 = int_to_ptr.vmem [resolvable:$true] %s29_s18 }
   0x5   :  { %s198_s19 = scalar_lea.vmem %s21_s16, 128  ;;  %p203_p1 = scmp.lt.s32.totalorder %s21_s16, %s21_s16 }
   0x6   :  { %p199_p0 = scmp.ne.s32.totalorder %s21_s16, %s198_s19  ;;  %p204_p2 = scmp.lt.s32.totalorder %s198_s19, %s198_s19 }
   0x8   :  { %p205_p3 = por %p204_p2, %p203_p1 }
   0xa   :  { %p206_p4 = pnand %p205_p3, %p199_p0 }
   0xc   :  { %209 = shalt.err (!%p206_p4)
}
   0xd   :  { %23 = dma.hbm_to_vmem [thread:$0]  %s325_s0, 128, %s21_s16, [#allocation3]  }
   0xe   :  { %s218_s22 = scalar_lea.vmem %s30_s18, 1024  ;;  %p223_p6 = scmp.lt.s32.totalorder %s30_s18, %s30_s18 }
   0xf   :  { %p219_p5 = scmp.ne.s32.totalorder %s30_s18, %s218_s22  ;;  %p224_p7 = scmp.lt.s32.totalorder %s218_s22, %s218_s22 }
  0x11   :  { %p225_p8 = por %p224_p7, %p223_p6 }
  0x13   :  { %p226_p9 = pnand %p225_p8, %p219_p5 }
  0x15   :  { %229 = shalt.err (!%p226_p9)
}
  0x16   :  { %s280_s23 = smov 256   ;;  %s281_s24 = smov 16  }
  0x17   :  { %35 = dma.hbm_to_vmem [thread:$0]  %s326_s1, 1024, %s30_s18, [#allocation6], %s280_s23, %s280_s23, %s281_s24  }
  0x18   :  { %270 = dma.done.wait [#allocation3], 128  }
  0x19   :  { %271 = vsyncadd [#allocation3], 4294967168 }
  0x1a   :  { %272 = dma.done.wait [#allocation6], 1024  }
  0x1b   :  { %273 = vsyncadd [#allocation6], 4294966272  ;;  %v282_v0 = vmov 0.0   ;;  %v52_v1 = vld [vmem:[#allocation5 + $0x38] sm:$0xff]  ;;  %v51_v2 = vld [vmem:[#allocation5 + $0x30] sm:$0xff]  ;;  %vm65_vm0 = vcmask 261120   ;;  %v55_v10 = vlaneseq }
  0x1c   :  { %133 = vmatprep.mubr.f32.mxu0 %v282_v0  ;;  %v50_v3 = vld [vmem:[#allocation5 + $0x28] sm:$0xff]  ;;  %93 = vmatprep.subr.mxu0 %v52_v1  ;;  %v49_v4 = vld [vmem:[#allocation5 + $0x20] sm:$0xff]  ;;  %v48_v5 = vld [vmem:[#allocation5 + $0x18] sm:$0xff]  ;;  %s283_s27 = smov [#allocation7]  }
  0x1d   :  { %94 = vmatpush1.msra.mxu0 %v51_v2  ;;  %v47_v6 = vld [vmem:[#allocation5 + $0x10] sm:$0xff]  ;;  %v46_v7 = vld [vmem:[#allocation5 + $0x8] sm:$0xff]  ;;  %v45_v8 = vld [vmem:[#allocation5] sm:$0xff]  ;;  %v56_v11 = vshrl.u32 %v55_v10, 7  ;;  %s154_s28 = sshll.u32 %s283_s27, 4  ;;  %s155_s28 = int_to_ptr.vmem [resolvable:$true] %s154_s28 }
  0x1e   :  { %95 = vmatprep.subr.mxu0 %v50_v3  ;;  %v44_v9 = vld [vmem:[#allocation2] sm:$0xff]  ;;  %s230_s29 = scalar_lea.vmem %s155_s28, 128  ;;  %p235_p11 = scmp.lt.s32.totalorder %s155_s28, %s155_s28 }
  0x1f   :  { %96 = vmatpush1.msra.mxu0 %v49_v4  ;;  %v57_v12 = vsub.s32 0, %v56_v11  ;;  %v53_v13 = vld [vmem:[%s327_s2] sm:$0x3]  ;;  %v61_v14 = vsub.s32 1, %v56_v11  ;;  %p231_p10 = scmp.ne.s32.totalorder %s155_s28, %s230_s29  ;;  %p236_p12 = scmp.lt.s32.totalorder %s230_s29, %s230_s29 }
  0x20   :  { %97 = vmatprep.subr.mxu0 %v48_v5 }
  0x21   :  { %98 = vmatpush1.msra.mxu0 %v47_v6  ;;  %v58_v15 = vrot.slane %v53_v13, %v57_v12  ;;  %v62_v16 = vrot.slane %v53_v13, %v61_v14  ;;  %p237_p13 = por %p236_p12, %p235_p11 }
  0x22   :  { %99 = vmatprep.subr.mxu0 %v46_v7 }
  0x23   :  { %100 = vmatpush1.msra.mxu0 %v45_v8  ;;  %p238_p0 = pnand %p237_p13, %p231_p10 }
  0x24   :  { %178 = vmatmul.mubr.msk.f32.vlgmr.msra.gmra.mxu0 %vm65_vm0, %v44_v9 }
  0xe4   :  { %v135_v17 = vpop.f32.mrf.mxu0 }
  0xe5   :  { %v136_v18 = vadd.f32 %v135_v17, %v58_v15 }
  0xe6   :  { %v137_v19 = vpop.f32.mrf.mxu0 }
  0xe7   :  { %146 = vst [vmem:[#allocation7] sm:$0xff] %v136_v18  ;;  %v138_v20 = vadd.f32 %v137_v19, %v62_v16 }
  0xe8   :  { %241 = shalt.err (!%p238_p0)
}
  0xe9   :  { %157 = dma.vmem_to_hbm [thread:$0]  %s155_s28, 128, %s328_s3, [#allocation4]   ;;  %v140_v21 = vmul.f32 0.5, %v138_v20 }
  0xea   :  { %s284_s5 = smov [#allocation8]  }
  0xeb   :  { %186 = vtanh.f32 %v140_v21  ;;  %s164_s6 = sshll.u32 %s284_s5, 4  ;;  %s165_s6 = int_to_ptr.vmem [resolvable:$true] %s164_s6 }
  0xec   :  { %188 = vtanh.f32 %v136_v18  ;;  %s250_s7 = scalar_lea.vmem %s165_s6, 128  ;;  %p255_p2 = scmp.lt.s32.totalorder %s165_s6, %s165_s6 }
  0xed   :  { %p251_p1 = scmp.ne.s32.totalorder %s165_s6, %s250_s7  ;;  %p256_p3 = scmp.lt.s32.totalorder %s250_s7, %s250_s7 }
  0xef   :  { %p257_p4 = por %p256_p3, %p255_p2 }
  0xf1   :  { %p258_p5 = pnand %p257_p4, %p251_p1 }
  0xf8   :  { %v187_v22 = vpop.eup %186 }
  0xf9   :  { %v142_v23 = vadd.f32 1.0, %v187_v22  ;;  %v189_v25 = vpop.eup %188 }
  0xfb   :  { %v143_v24 = vmul.f32 0.5, %v142_v23 }
  0xfd   :  { %v145_v26 = vmul.f32 %v189_v25, %v143_v24 }
  0xff   :  { %147 = vst [vmem:[#allocation8] sm:$0xff] %v145_v26 }
 0x100   :  { %261 = shalt.err (!%p258_p5)
}
 0x101   :  { %167 = dma.vmem_to_hbm [thread:$0]  %s165_s6, 128, %s329_s4, [#allocation9]  }
 0x102   :  { %274 = dma.done.wait [#allocation4], 128  }
 0x103   :  { %275 = vsyncadd [#allocation4], 4294967168 }
 0x104   :  { %276 = dma.done.wait [#allocation9], 128  }
 0x105   :  { %277 = vsyncadd [#allocation9], 4294967168 }
 0x106   :  { %174 = vsyncpa [#allocation3], 1 }
 0x107   :  { %175 = vsyncpa [#allocation6], 1 }
 0x108   :  { %176 = vsyncpa [#allocation4], 1 }
 0x109   :  { %177 = vsyncpa [#allocation9], 1 }

</bundles_post_ra>
